<compile_context>
chip_gen: v6e
topology: v6e:2x2x1
jax: 0.10.0
libtpu: 0.0.40
codegen_flags: <defaults>
</compile_context>

<pallas_src>
import numpy as np
import jax
import jax.numpy as jnp
from jax.experimental import pallas as pl
from jax.experimental.pallas import tpu as pltpu


def _round_up(a: int, b: int) -> int:
    return ((a + b - 1) // b) * b


def _vmem_capacity_bytes() -> int:
    """Physical VMEM per TensorCore, with a per-generation fallback."""
    try:
        return int(pltpu.get_tpu_info().vmem_capacity_bytes)
    except Exception:
        pass
    try:
        kind = jax.devices()[0].device_kind.lower()
        if "v7" in kind:
            return 64 << 20
        if any(tag in kind for tag in ("v5", "v6")):
            return 128 << 20
    except Exception:
        pass
    return 64 << 20  # conservative default


def _choose_tiles(M, K, N, budget, in_bytes, out_bytes, allow_single_buf_x,
                  max_tm=None, max_tn=None):
    """Pick (tm, tn, tk, full_k, x_bufs).

    Priorities: (1) collapse the reduction axis (no accumulator), (2) maximize
    tm (W_U is re-read from HBM cdiv(M, tm) times -> dominant stream), then
    (3) maximize tn for lane-dense stores / fewer grid steps.  x may be
    single-buffered (x_bufs=1) on tight-VMEM parts since its block only
    changes on the outer i step.
    """
    acc_bytes = 4
    tm_cands = [t for t in (2048, 1024, 512, 256, 128, 64, 32, 16)
                if max_tm is None or t <= max_tm] or [16]
    tn_cands = [t for t in (2048, 1024, 512, 256, 128)
                if max_tn is None or t <= max_tn] or [128]
    tk_cands = ((K,) if K <= 8192 else ()) + (4096, 2048, 1024, 512, 256, 128)

    for tk_c in tk_cands:
        tk = min(tk_c, K)
        full_k = tk == K
        for tm_c in tm_cands:
            tm = M if tm_c >= M else tm_c          # whole-dim tile is always legal
            for tn_c in tn_cands:
                tn = N if tn_c >= N else tn_c      # (128-multiples otherwise)
                x_buf_opts = (2, 1) if (allow_single_buf_x and full_k
                                        and N >= 2 * tn) else (2,)
                for xb in x_buf_opts:
                    vmem = (xb * tm * tk + 2 * tk * tn) * in_bytes \
                        + 2 * tm * tn * out_bytes
                    if not full_k:
                        vmem += tm * tn * acc_bytes
                    if vmem <= budget:
                        return tm, tn, tk, full_k, xb
    # Last-resort tiny tiles (always fit).
    tk = min(K, 128)
    return min(M, 16), min(N, 128), tk, tk == K, 2


def _unembed_kernel_fullk(x_ref, w_ref, o_ref):
    # Single-shot matmul: whole reduction dim in one tile -> no accumulator.
    o_ref[...] = jnp.dot(
        x_ref[...], w_ref[...], preferred_element_type=jnp.float32
    ).astype(o_ref.dtype)


def _unembed_kernel_splitk(x_ref, w_ref, o_ref, acc_ref):
    # Fallback when d_model is too large for a single VMEM tile.
    @pl.when(pl.program_id(2) == 0)
    def _():
        acc_ref[...] = jnp.zeros_like(acc_ref)

    acc_ref[...] += jnp.dot(
        x_ref[...], w_ref[...], preferred_element_type=jnp.float32
    )

    @pl.when(pl.program_id(2) == pl.num_programs(2) - 1)
    def _():
        o_ref[...] = acc_ref[...].astype(o_ref.dtype)


def unembed(x, w_u, *, compute_dtype=jnp.bfloat16, out_dtype=None,
            vmem_cap_bytes=None, max_tm=None, max_tn=None):
    """Computes x @ w_u where x is [..., d_model], w_u is [d_model, d_vocab].

    compute_dtype: MXU input dtype.  bf16 (default) halves HBM traffic on the
      dominant W_U stream; pass jnp.float32 for full-precision parity.  Pass
      w_u *already* in compute_dtype to avoid a per-call weight cast.
    out_dtype: logits dtype (default result_type(x, w_u)); bf16 halves the
      logits writeback when the consumer allows it.
    """
    *lead, d_model = x.shape
    d_model_w, d_vocab = w_u.shape
    assert d_model == d_model_w, (d_model, d_model_w)
    M = int(np.prod(lead)) if lead else 1

    if out_dtype is None:
        out_dtype = jnp.result_type(x.dtype, w_u.dtype)
    in_bytes = jnp.dtype(compute_dtype).itemsize
    out_bytes = jnp.dtype(out_dtype).itemsize

    vmem_cap = int(vmem_cap_bytes) if vmem_cap_bytes else _vmem_capacity_bytes()
    # ~0.75 of VMEM with an explicit ~16 MiB compiler headroom.
    budget = max(min(int(vmem_cap * 0.75), vmem_cap - (16 << 20)), 8 << 20)
    allow_single_buf_x = vmem_cap <= (96 << 20)   # tight-VMEM (v7x-class) parts

    tm, tn, tk, full_k, x_bufs = _choose_tiles(
        M, d_model, d_vocab, budget, in_bytes, out_bytes, allow_single_buf_x,
        max_tm=max_tm, max_tn=max_tn)

    # Per-call casts only when the caller did not pre-cast (hoisted W_U cast).
    x2d = x.reshape(M, d_model)
    if x2d.dtype != compute_dtype:
        x2d = x2d.astype(compute_dtype)
    w = w_u if w_u.dtype == compute_dtype else w_u.astype(compute_dtype)

    grid_m = pl.cdiv(M, tm)
    grid_n = pl.cdiv(d_vocab, tn)

    vmem_needed = (x_bufs * tm * tk + 2 * tk * tn) * in_bytes \
        + 2 * tm * tn * out_bytes
    if not full_k:
        vmem_needed += tm * tn * 4
    vmem_limit = int(min(vmem_cap, max(vmem_needed + (16 << 20), 32 << 20)))

    if full_k:
        x_spec_kwargs = {}
        if x_bufs == 1:
            # x block only changes on the outer i step; single-buffering it
            # reclaims VMEM for a larger, lane-dense tn (v7x).
            x_spec_kwargs["pipeline_mode"] = pl.Buffered(buffer_count=1)
        grid_spec = pltpu.PrefetchScalarGridSpec(
            num_scalar_prefetch=0,
            grid=(grid_m, grid_n),
            in_specs=[
                pl.BlockSpec((tm, d_model), lambda i, j: (i, 0), **x_spec_kwargs),
                pl.BlockSpec((d_model, tn), lambda i, j: (0, j)),
            ],
            out_specs=pl.BlockSpec((tm, tn), lambda i, j: (i, j)),
        )
        kernel = _unembed_kernel_fullk
        dim_sem = ("parallel", "parallel")
        bytes_accessed = (M * d_model * in_bytes
                          + int(grid_m) * d_model * d_vocab * in_bytes
                          + M * d_vocab * out_bytes)
    else:
        # Split-K fallback for very large d_model.  Only the reduction axis is
        # padded (zeros are neutral); M/N tails stay masked, never copied.
        Kp = _round_up(d_model, tk)
        if Kp != d_model:
            x2d = jnp.pad(x2d, ((0, 0), (0, Kp - d_model)))
            w = jnp.pad(w, ((0, Kp - d_model), (0, 0)))
        grid_k = Kp // tk
        grid_spec = pltpu.PrefetchScalarGridSpec(
            num_scalar_prefetch=0,
            grid=(grid_m, grid_n, grid_k),
            in_specs=[
                pl.BlockSpec((tm, tk), lambda i, j, k: (i, k)),
                pl.BlockSpec((tk, tn), lambda i, j, k: (k, j)),
            ],
            out_specs=pl.BlockSpec((tm, tn), lambda i, j, k: (i, j)),
            scratch_shapes=[pltpu.VMEM((tm, tn), jnp.float32)],
        )
        kernel = _unembed_kernel_splitk
        dim_sem = ("parallel", "parallel", "arbitrary")
        bytes_accessed = (int(grid_n) * M * Kp * in_bytes
                          + int(grid_m) * Kp * d_vocab * in_bytes
                          + M * d_vocab * out_bytes)

    cost = pl.CostEstimate(
        flops=2 * M * d_model * d_vocab,
        transcendentals=0,
        bytes_accessed=int(bytes_accessed),
    )

    # TODO(synk): optional fp8(e4m3)+per-column-scale W_U storage path for the
    # v7x MXU, and a fused softmax/top-k epilogue to drop the logits writeback.
    out2d = pl.pallas_call(
        kernel,
        out_shape=jax.ShapeDtypeStruct((M, d_vocab), out_dtype),
        grid_spec=grid_spec,
        compiler_params=pltpu.CompilerParams(
            dimension_semantics=dim_sem,
            vmem_limit_bytes=vmem_limit,
        ),
        cost_estimate=cost,
    )(x2d, w)

    return out2d.reshape(*lead, d_vocab)


if __name__ == "__main__":
    # Shapes consistent with the module's forward:
    #   x: [batch, seq, d_model], W_U: [d_model, d_vocab]
    batch, seq, d_model, d_vocab = 2, 8, 32, 128

    key = jax.random.PRNGKey(0)
    kx, kw = jax.random.split(key)

    x = jax.random.normal(kx, (batch, seq, d_model), dtype=jnp.float32)
    # Deterministic init mirroring nn.Parameter(t.randn(d_model, d_vocab)/sqrt(d_vocab))
    W_U = jax.random.normal(kw, (d_model, d_vocab), dtype=jnp.float32) / np.sqrt(
        d_vocab
    )

    # Hoisted once-per-parameter cast (perf feedback): keep W_U in bf16 so the
    # kernel call issues no per-call weight cast.
    W_U_bf16 = W_U.astype(jnp.bfloat16)

    out = jax.block_until_ready(unembed(x, W_U_bf16))
    ref = x @ W_U
    np.testing.assert_allclose(np.asarray(out), np.asarray(ref), rtol=2e-2, atol=2e-2)

    # Non-divisible M and d_vocab with f32 weights (exercises the in-call cast
    # path and whole-array tiles).
    b2, s2, dv2 = 5, 3, 200
    kx2, kw2 = jax.random.split(jax.random.PRNGKey(1))
    x2 = jax.random.normal(kx2, (b2, s2, d_model), dtype=jnp.float32)
    W2 = jax.random.normal(kw2, (d_model, dv2), dtype=jnp.float32) / np.sqrt(dv2)
    out2 = jax.block_until_ready(unembed(x2, W2))
    ref2 = x2 @ W2
    np.testing.assert_allclose(np.asarray(out2), np.asarray(ref2), rtol=2e-2, atol=2e-2)

    # Force multi-block grids with partial boundary tiles to exercise the
    # no-padding cdiv/masked path: grid_m = cdiv(35,16) = 3, grid_n = cdiv(200,128) = 2.
    b3, s3, dv3 = 5, 7, 200
    kx3, kw3 = jax.random.split(jax.random.PRNGKey(2))
    x3 = jax.random.normal(kx3, (b3, s3, d_model), dtype=jnp.float32)
    W3 = (jax.random.normal(kw3, (d_model, dv3), dtype=jnp.float32) / np.sqrt(dv3)
          ).astype(jnp.bfloat16)
    out3 = jax.block_until_ready(unembed(x3, W3, max_tm=16, max_tn=128))
    ref3 = x3 @ W3.astype(jnp.float32)
    np.testing.assert_allclose(np.asarray(out3), np.asarray(ref3), rtol=2e-2, atol=2e-2)

    print("KERNEL_OK")
</pallas_src>

<mosaic_0001>
module attributes {stable_mosaic.version = 11 : i64} {
  func.func @_unembed_kernel_fullk(%arg0: i32, %arg1: i32, %arg2: memref<16x32xbf16, #tpu.memory_space<vmem>>, %arg3: memref<32x128xbf16, #tpu.memory_space<vmem>>, %arg4: memref<16x128xf32, #tpu.memory_space<vmem>>) attributes {dimension_semantics = [#tpu.dimension_semantics<parallel>, #tpu.dimension_semantics<parallel>], iteration_bounds = array<i64: 1, 1>, scalar_prefetch = 0 : i64, scratch_operands = 0 : i64, tpu.core_type = #tpu.core_type<tc>, window_params = [{transform_indices = @transform_0, window_bounds = array<i64: 16, 32>}, {transform_indices = @transform_1, window_bounds = array<i64: 32, 128>}, {transform_indices = @transform_2, window_bounds = array<i64: 16, 128>}]} {
    %c0 = arith.constant 0 : index
    %c0_0 = arith.constant 0 : index
    %0 = vector.load %arg2[%c0, %c0_0] : memref<16x32xbf16, #tpu.memory_space<vmem>>, vector<16x32xbf16>
    %c0_1 = arith.constant 0 : index
    %c0_2 = arith.constant 0 : index
    %1 = vector.load %arg3[%c0_1, %c0_2] : memref<32x128xbf16, #tpu.memory_space<vmem>>, vector<32x128xbf16>
    %cst = arith.constant dense<0.000000e+00> : vector<16x128xf32>
    %2 = tpu.matmul %0, %1, %cst {dimension_numbers = #tpu.dot_dimension_numbers<[1], [0], [0], [1], [0, 0, 1, 1], [], []>} : vector<16x32xbf16>, vector<32x128xbf16>, vector<16x128xf32> -> vector<16x128xf32>
    %c0_3 = arith.constant 0 : index
    %c0_4 = arith.constant 0 : index
    %3 = vector.load %arg4[%c0_3, %c0_4] : memref<16x128xf32, #tpu.memory_space<vmem>>, vector<16x128xf32>
    tpu.vector_store %arg4[%c0_3, %c0_4], %2 {strides = array<i32>} : memref<16x128xf32, #tpu.memory_space<vmem>>, vector<16x128xf32>,
    return
  }
  func.func @transform_0(%arg0: i32, %arg1: i32) -> (i32, i32) {
    %c0_i32 = arith.constant 0 : i32
    %c0_i32_0 = arith.constant 0 : i32
    return %arg0, %c0_i32 : i32, i32
  }
  func.func @transform_1(%arg0: i32, %arg1: i32) -> (i32, i32) {
    %c0_i32 = arith.constant 0 : i32
    %c0_i32_0 = arith.constant 0 : i32
    return %c0_i32, %arg1 : i32, i32
  }
  func.func @transform_2(%arg0: i32, %arg1: i32) -> (i32, i32) {
    %c0_i32 = arith.constant 0 : i32
    return %arg0, %arg1 : i32, i32
  }
}

</mosaic_0001>

<bundles_post_ra>
// kernel: tpu_custom_call.1
= control target key start
LH: loop header
LB: loop body
LE: loop exit
PB: predicated region body
PF: predicated region fallthrough
CT: control target
= control target key end

     0   :  { %7 = vsyncpa [#allocation3], 0  ;;  %s255_s0 = inlined_call_operand.hbm [shape: bf16[16,32], index: 0, kind: input, shape index: {}]   ;;  %s256_s1 = inlined_call_operand.hbm [shape: bf16[32,128], index: 1, kind: input, shape index: {}]   ;;  %s257_s2 = inlined_call_operand.hbm [shape: f32[16,128], index: 2, kind: output, shape index: {}]  }
   0x1   :  { %8 = vsyncpa [#allocation6], 0 }
   0x2   :  { %9 = vsyncpa [#allocation4], 0  ;;  %s222_s9 = smov [#allocation2]  }
   0x3   :  { %s15_s10 = sshll.u32 %s222_s9, 4  ;;  %s16_s10 = int_to_ptr.vmem [resolvable:$true] %s15_s10 }
   0x4   :  { %s164_s11 = scalar_lea.vmem %s16_s10, 128  ;;  %p169_p1 = scmp.lt.s32.totalorder %s16_s10, %s16_s10 }
   0x5   :  { %p165_p0 = scmp.ne.s32.totalorder %s16_s10, %s164_s11  ;;  %p170_p2 = scmp.lt.s32.totalorder %s164_s11, %s164_s11 }
   0x7   :  { %p171_p3 = por %p170_p2, %p169_p1 }
   0x9   :  { %p172_p4 = pnand %p171_p3, %p165_p0 }
   0xb   :  { %175 = shalt.err (!%p172_p4)
}
   0xc   :  { %s223_s12 = smov 64   ;;  %s224_s13 = smov 4  }
   0xd   :  { %21 = dma.hbm_to_vmem [thread:$0]  %s255_s0, 128, %s16_s10, [#allocation3], %s223_s12, %s223_s12, %s224_s13  }
   0xe   :  { %s225_s16 = smov [#allocation5]  }
   0xf   :  { %s27_s17 = sshll.u32 %s225_s16, 4  ;;  %s28_s17 = int_to_ptr.vmem [resolvable:$true] %s27_s17 }
  0x10   :  { %s184_s18 = scalar_lea.vmem %s28_s17, 256  ;;  %p189_p6 = scmp.lt.s32.totalorder %s28_s17, %s28_s17 }
  0x11   :  { %p185_p5 = scmp.ne.s32.totalorder %s28_s17, %s184_s18  ;;  %p190_p7 = scmp.lt.s32.totalorder %s184_s18, %s184_s18 }
  0x13   :  { %p191_p8 = por %p190_p7, %p189_p6 }
  0x15   :  { %p192_p9 = pnand %p191_p8, %p185_p5 }
  0x17   :  { %195 = shalt.err (!%p192_p9)
}
  0x18   :  { %33 = dma.hbm_to_vmem [thread:$0]  %s256_s1, 256, %s28_s17, [#allocation6], %s223_s12, %s223_s12, %s224_s13  }
  0x19   :  { %216 = dma.done.wait [#allocation3], 128  }
  0x1a   :  { %217 = vsyncadd [#allocation3], 4294967168 }
  0x1b   :  { %218 = dma.done.wait [#allocation6], 256  }
  0x1c   :  { %219 = vsyncadd [#allocation6], 4294967040  ;;  %v226_v0 = vmov 0.0   ;;  %vm227_vm0 = vmmov 0   ;;  %v153_v1 = vld [vmem:[#allocation5 + $0x8] sm:$0xff]   ;;  %v154_v2 = vld [vmem:[#allocation5] sm:$0xff]  }
  0x1d   :  { %136 = vmatprep.subr.bf16.mxu0 %v226_v0  ;;  %140 = vmatprep.mubr.msk.bf16.mxu0 %vm227_vm0, %v226_v0  ;;  %v155_v3 = vld [vmem:[#allocation2] sm:$0xff]   ;;  %vm64_vm1 = vcmask 261120   ;;  %s228_s0 = smov [#allocation7]  }
  0x1e   :  { %137 = vmatpush3.bf16.msra.mxu0 %v153_v1  ;;  %s116_s21 = sshll.u32 %s228_s0, 4  ;;  %s117_s21 = int_to_ptr.vmem [resolvable:$true] %s116_s21 }
  0x1f   :  { %138 = vmatprep.subr.bf16.mxu0 %v226_v0  ;;  %s196_s1 = scalar_lea.vmem %s117_s21, 256  ;;  %p201_p11 = scmp.lt.s32.totalorder %s117_s21, %s117_s21 }
  0x20   :  { %p197_p10 = scmp.ne.s32.totalorder %s117_s21, %s196_s1  ;;  %p202_p12 = scmp.lt.s32.totalorder %s196_s1, %s196_s1 }
  0x22   :  { %139 = vmatpush3.bf16.msra.mxu0 %v154_v2  ;;  %p203_p13 = por %p202_p12, %p201_p11 }
  0x24   :  { %p204_p0 = pnand %p203_p13, %p197_p10 }
  0x25   :  { %141 = vmatmul.mubr.msk.bf16.vlgmr.msra.gmra.mxu0 %vm64_vm1, %v155_v3 }
  0xe5   :  { %v102_v4 = vpop.f32.mrf.mxu0 }
  0xe6   :  { %109 = vst [vmem:[#allocation7] sm:$0xff] %v102_v4 }
  0xe7   :  { %v142_v5 = vpop.f32.mrf.mxu0 }
  0xe9   :  { %v105_v6 = vpop.f32.mrf.mxu0 }
  0xea   :  { %110 = vst [vmem:[#allocation7 + $0x8] sm:$0xff] %v105_v6 }
  0xeb   :  { %v143_v7 = vpop.f32.mrf.mxu0 }
  0xec   :  { %207 = shalt.err (!%p204_p0)
}
  0xed   :  { %s229_s22 = smov 128   ;;  %s230_s23 = smov 8  }
  0xee   :  { %122 = dma.vmem_to_hbm [thread:$0]  %s117_s21, 256, %s257_s2, [#allocation4], %s229_s22, %s229_s22, %s230_s23  }
  0xef   :  { %220 = dma.done.wait [#allocation4], 256  }
  0xf0   :  { %221 = vsyncadd [#allocation4], 4294967040 }
  0xf1   :  { %126 = vsyncpa [#allocation3], 1 }
  0xf2   :  { %127 = vsyncpa [#allocation6], 1 }
  0xf3   :  { %128 = vsyncpa [#allocation4], 1 }

</bundles_post_ra>
